<compile_context>
chip_gen: v5e
topology: v5e:2x2
jax: 0.10.0
libtpu: 0.0.40
codegen_flags: <defaults>
</compile_context>

<pallas_src>
import functools

import jax
import jax.numpy as jnp
from jax.experimental import pallas as pl
from jax.experimental.pallas import tpu as pltpu

LANE = 128        # vreg lane width (fast axis)
SUBLANE = 8       # f32 sublanes per vreg
VREG = SUBLANE * LANE


def _device_kind():
    try:
        return jax.devices()[0].device_kind.lower()
    except Exception:
        return ""


def _is_v7x():
    kind = _device_kind()
    return ("v7" in kind) or ("7x" in kind)


def _num_tensorcores():
    # v5e / v6e expose a single TensorCore per Pallas device; v7x has two.
    return 2 if _is_v7x() else 1


def _default_tile_rows():
    # Bigger steps amortize the ~0.35 us/grid-step overhead against the faster
    # HBM of newer chips: 8192 rows (4 MiB f32 / input block) on v7x, 4096
    # elsewhere.  2 inputs x 2 buffers stays well inside every scoped budget.
    return 8192 if _is_v7x() else 4096


def _mse_partial_kernel(x_ref, t_ref, o_ref, *, tile_rows, blocks_per_core,
                        valid_rows, needs_mask, fold_k):
    c = pl.program_id(0)          # core axis (CORE_PARALLEL on v7x, size 1 else)
    i = pl.program_id(1)          # reduction axis ("arbitrary"); o_ref resident

    @pl.when(i == 0)
    def _():
        o_ref[...] = jnp.zeros_like(o_ref)

    d = t_ref[...].astype(jnp.float32) - x_ref[...].astype(jnp.float32)
    sq = d * d

    r = tile_rows // SUBLANE      # number of (8, 128) vregs in the block

    def fold(block):
        # Fold (tile_rows, 128) onto (8, 128) with pure VPU adds.  fold_k > 1
        # builds fold_k independent add chains (ILP across the VALU slots)
        # before a short fold_k -> 1 collapse; no per-step cross-lane XLU
        # reduction and no narrow masked store.
        if fold_k > 1:
            p = block.reshape(r // fold_k, fold_k, SUBLANE, LANE)
            return p.sum(axis=0).sum(axis=0)
        return block.reshape(r, SUBLANE, LANE).sum(axis=0)

    if needs_mask:
        # Only blocks that can reach past `valid_rows` (partial last block, or
        # a clamped duplicate block on the 2-core split) pay for the mask.
        row0 = (c * blocks_per_core + i) * tile_rows
        is_tail = row0 + tile_rows > valid_rows

        @pl.when(jnp.logical_not(is_tail))
        def _():
            o_ref[0] += fold(sq)

        @pl.when(is_tail)
        def _():
            rid = row0 + jax.lax.broadcasted_iota(jnp.int32, sq.shape, 0)
            # Select (not multiply-by-mask) so unspecified OOB data is dropped
            # even if it is NaN/Inf.
            o_ref[0] += fold(jnp.where(rid < valid_rows, sq, 0.0))
    else:
        o_ref[0] += fold(sq)


def pdc_loss(inp, target, *, tile_rows=None, min_kernel_elems=0):
    """Mean squared error over all elements: ((target - input) ** 2).mean()."""
    assert inp.shape == target.shape, "input/target shapes must match"
    n = inp.size
    assert n > 0

    x = inp.reshape(-1)
    t = target.reshape(-1)

    # The kernel consumes the 128-aligned prefix as a lane-dense (rows, 128)
    # slab; the <128-element ragged tail is folded in with plain jnp below.
    main = (n // LANE) * LANE
    tail = n - main
    rows = main // LANE

    # Tiny inputs: the kernel would be pure overhead vs a single fused XLA
    # reduce.  (Callers streaming many small tensors can raise
    # min_kernel_elems to e.g. 1 << 16.)
    if rows < SUBLANE or n < min_kernel_elems:
        d = t.astype(jnp.float32) - x.astype(jnp.float32)
        return jnp.sum(d * d) * (1.0 / float(n))

    if tile_rows is None:
        tile_rows = _default_tile_rows()
    # Multiple of 8 sublanes and never larger than the array's row extent.
    tile_rows = max(SUBLANE, (tile_rows // SUBLANE) * SUBLANE)
    tile_rows = min(tile_rows, (rows // SUBLANE) * SUBLANE)

    num_blocks = pl.cdiv(rows, tile_rows)
    num_cores = min(_num_tensorcores(), num_blocks)
    bpc = pl.cdiv(num_blocks, num_cores)                 # blocks per core
    needs_mask = num_cores * bpc * tile_rows > rows      # any OOB coverage?

    r = tile_rows // SUBLANE
    fold_k = 8 if (r % 8 == 0 and r >= 64) else 1

    x2d = x[:main].reshape(rows, LANE)    # free views when n % 128 == 0
    t2d = t[:main].reshape(rows, LANE)

    def in_map(c, i):
        # Clamp fully out-of-range steps (odd block count on the 2-core split)
        # onto the last valid block; their contribution is masked to zero.
        return (jnp.minimum(c * bpc + i, num_blocks - 1), 0)

    kernel = functools.partial(
        _mse_partial_kernel,
        tile_rows=tile_rows,
        blocks_per_core=bpc,
        valid_rows=rows,
        needs_mask=needs_mask,
        fold_k=fold_k,
    )

    itemsizes = x2d.dtype.itemsize + t2d.dtype.itemsize
    in_block_bytes = tile_rows * LANE * itemsizes        # both inputs, 1 buffer
    vmem_limit = min(48 << 20, max(16 << 20, 2 * in_block_bytes + (4 << 20)))

    if num_cores > 1:
        dim_sem = (getattr(pltpu, "CORE_PARALLEL", pltpu.PARALLEL),
                   pltpu.ARBITRARY)
    else:
        dim_sem = ("arbitrary", "arbitrary")

    partials = pl.pallas_call(
        kernel,
        out_shape=jax.ShapeDtypeStruct((num_cores, SUBLANE, LANE), jnp.float32),
        grid_spec=pltpu.PrefetchScalarGridSpec(
            num_scalar_prefetch=0,
            grid=(num_cores, bpc),
            in_specs=[
                pl.BlockSpec((tile_rows, LANE), in_map),
                pl.BlockSpec((tile_rows, LANE), in_map),
            ],
            # Same block index across the reduction axis -> resident output,
            # used directly as the accumulator (no VMEM scratch).
            out_specs=pl.BlockSpec((1, SUBLANE, LANE), lambda c, i: (c, 0, 0)),
        ),
        compiler_params=pltpu.CompilerParams(
            dimension_semantics=dim_sem,
            vmem_limit_bytes=vmem_limit,
        ),
        cost_estimate=pl.CostEstimate(
            flops=3 * main,
            transcendentals=0,
            bytes_accessed=main * itemsizes + num_cores * VREG * 4,
        ),
    )(x2d, t2d)

    # Single cross-lane reduce on the tiny partials array.
    total = jnp.sum(partials)

    if tail:
        dt_ = t[main:].astype(jnp.float32) - x[main:].astype(jnp.float32)
        total = total + jnp.sum(dt_ * dt_)

    # Mean over the TRUE element count.
    return total * (1.0 / float(n))


if __name__ == "__main__":
    key = jax.random.PRNGKey(0)

    def check(shape, dtype=jnp.float32, idx=0, **kw):
        k1, k2 = jax.random.split(jax.random.fold_in(key, idx))
        a = jax.random.normal(k1, shape, dtype=jnp.float32).astype(dtype)
        b = jax.random.normal(k2, shape, dtype=jnp.float32).astype(dtype)
        loss = jax.block_until_ready(pdc_loss(a, b, **kw))
        ref = jnp.mean((b.astype(jnp.float32) - a.astype(jnp.float32)) ** 2)
        assert jnp.allclose(loss, ref, rtol=2e-5, atol=1e-6), (shape, dtype, loss, ref)
        return loss

    # Primary small NCHW case consistent with a dense-prediction loss.
    check((2, 4, 16, 16), idx=0)
    # Non-128-aligned size: kernel handles the aligned prefix, jnp the tail,
    # and the partial-last-block mask path is exercised.
    check((2, 3, 17, 19), idx=1)
    # Larger tensor: single big tile (default) ...
    check((8, 16, 64, 64), idx=2)
    # ... and an explicit small tile to exercise multi-step accumulation into
    # the resident output block plus the fold_k split-chain path.
    check((8, 16, 64, 64), idx=2, tile_rows=512)
    # bf16 pass-through (no wrapper-side upcast; kernel upcasts per-vreg).
    check((2, 4, 16, 16), dtype=jnp.bfloat16, idx=3)

    print("KERNEL_OK")
</pallas_src>

<mosaic_0001>
module attributes {stable_mosaic.version = 11 : i64} {
  func.func @_mse_partial_kernel(%arg0: i32, %arg1: i32, %arg2: memref<16x128xf32, #tpu.memory_space<vmem>>, %arg3: memref<16x128xf32, #tpu.memory_space<vmem>>, %arg4: memref<1x8x128xf32, #tpu.memory_space<vmem>>) attributes {dimension_semantics = [#tpu.dimension_semantics<arbitrary>, #tpu.dimension_semantics<arbitrary>], iteration_bounds = array<i64: 1, 1>, scalar_prefetch = 0 : i64, scratch_operands = 0 : i64, tpu.core_type = #tpu.core_type<tc>, window_params = [{transform_indices = @transform_0, window_bounds = array<i64: 16, 128>}, {transform_indices = @transform_1, window_bounds = array<i64: 16, 128>}, {transform_indices = @transform_2, window_bounds = array<i64: 1, 8, 128>}]} {
    %c0_i32 = arith.constant 0 : i32
    %0 = arith.cmpi eq, %arg1, %c0_i32 : i32
    %1 = arith.extui %0 : i1 to i32
    %c0_i32_0 = arith.constant 0 : i32
    %2 = arith.cmpi ne, %1, %c0_i32_0 : i32
    scf.if %2 {
      %cst_10 = arith.constant 0.000000e+00 : f32
      %15 = vector.broadcast %cst_10 : f32 to vector<1x8x128xf32>
      %c0_11 = arith.constant 0 : index
      %c0_12 = arith.constant 0 : index
      %c0_13 = arith.constant 0 : index
      %16 = vector.load %arg4[%c0_11, %c0_12, %c0_13] : memref<1x8x128xf32, #tpu.memory_space<vmem>>, vector<1x8x128xf32>
      tpu.vector_store %arg4[%c0_11, %c0_12, %c0_13], %15 {strides = array<i32>} : memref<1x8x128xf32, #tpu.memory_space<vmem>>, vector<1x8x128xf32>,
    } else {
    }
    %c0 = arith.constant 0 : index
    %c0_1 = arith.constant 0 : index
    %3 = vector.load %arg3[%c0, %c0_1] : memref<16x128xf32, #tpu.memory_space<vmem>>, vector<16x128xf32>
    %c0_2 = arith.constant 0 : index
    %c0_3 = arith.constant 0 : index
    %4 = vector.load %arg2[%c0_2, %c0_3] : memref<16x128xf32, #tpu.memory_space<vmem>>, vector<16x128xf32>
    %5 = arith.subf %3, %4 : vector<16x128xf32>
    %6 = arith.mulf %5, %5 : vector<16x128xf32>
    %c0_4 = arith.constant 0 : index
    %c0_5 = arith.constant 0 : index
    %c0_6 = arith.constant 0 : index
    %7 = vector.load %arg4[%c0_4, %c0_5, %c0_6] : memref<1x8x128xf32, #tpu.memory_space<vmem>>, vector<1x8x128xf32>
    %8 = vector.shape_cast %7 : vector<1x8x128xf32> to vector<8x128xf32>
    %9 = vector.shape_cast %6 : vector<16x128xf32> to vector<2x8x128xf32>
    %cst = arith.constant dense<0.000000e+00> : vector<8x128xf32>
    %10 = vector.multi_reduction <add>, %9, %cst [0] : vector<2x8x128xf32> to vector<8x128xf32>
    %11 = arith.addf %8, %10 : vector<8x128xf32>
    %c0_7 = arith.constant 0 : index
    %c0_8 = arith.constant 0 : index
    %c0_9 = arith.constant 0 : index
    %12 = vector.load %arg4[%c0_7, %c0_8, %c0_9] : memref<1x8x128xf32, #tpu.memory_space<vmem>>, vector<1x8x128xf32>
    %13 = vector.shape_cast %12 : vector<1x8x128xf32> to vector<8x128xf32>
    %14 = vector.shape_cast %11 : vector<8x128xf32> to vector<1x8x128xf32>
    tpu.vector_store %arg4[%c0_7, %c0_8, %c0_9], %14 {strides = array<i32>} : memref<1x8x128xf32, #tpu.memory_space<vmem>>, vector<1x8x128xf32>,
    return
  }
  func.func @transform_0(%arg0: i32, %arg1: i32) -> (i32, i32) {
    %c1_i32 = arith.constant 1 : i32
    %0 = arith.muli %arg0, %c1_i32 : i32
    %1 = arith.addi %0, %arg1 : i32
    %c0_i32 = arith.constant 0 : i32
    %2 = arith.minsi %1, %c0_i32 : i32
    %c0_i32_0 = arith.constant 0 : i32
    %c0_i32_1 = arith.constant 0 : i32
    return %2, %c0_i32_0 : i32, i32
  }
  func.func @transform_1(%arg0: i32, %arg1: i32) -> (i32, i32) {
    %c1_i32 = arith.constant 1 : i32
    %0 = arith.muli %arg0, %c1_i32 : i32
    %1 = arith.addi %0, %arg1 : i32
    %c0_i32 = arith.constant 0 : i32
    %2 = arith.minsi %1, %c0_i32 : i32
    %c0_i32_0 = arith.constant 0 : i32
    %c0_i32_1 = arith.constant 0 : i32
    return %2, %c0_i32_0 : i32, i32
  }
  func.func @transform_2(%arg0: i32, %arg1: i32) -> (i32, i32, i32) {
    %c0_i32 = arith.constant 0 : i32
    %c0_i32_0 = arith.constant 0 : i32
    %c0_i32_1 = arith.constant 0 : i32
    return %arg0, %c0_i32, %c0_i32_0 : i32, i32, i32
  }
}

</mosaic_0001>

<bundles_post_ra>
// kernel: tpu_custom_call.1
= control target key start
LH: loop header
LB: loop body
LE: loop exit
PB: predicated region body
PF: predicated region fallthrough
CT: control target
= control target key end

     0   :  { %7 = vsyncpa [#allocation3], 0  ;;  %s216_s0 = inlined_call_operand.hbm [shape: f32[16,128], index: 0, kind: input, shape index: {}]   ;;  %s217_s1 = inlined_call_operand.hbm [shape: f32[16,128], index: 1, kind: input, shape index: {}]   ;;  %s218_s2 = inlined_call_operand.hbm [shape: f32[1,8,128], index: 2, kind: output, shape index: {}]  }
   0x1   :  { %8 = vsyncpa [#allocation6], 0 }
   0x2   :  { %9 = vsyncpa [#allocation4], 0  ;;  %s20_s11 = sshll.u32 %s216_s0, 4  ;;  %s187_s12 = smov [#allocation2]   ;;  %s21_s11 = int_to_ptr.hbm [resolvable:$true] %s20_s11 }
   0x3   :  { %s22_s13 = sshll.u32 %s187_s12, 4  ;;  %s39_s16 = sshll.u32 %s217_s1, 4  ;;  %s23_s13 = int_to_ptr.vmem [resolvable:$true] %s22_s13  ;;  %s40_s16 = int_to_ptr.hbm [resolvable:$true] %s39_s16 }
   0x4   :  { %s188_s17 = smov 128   ;;  %s189_s18 = smov 8  }
   0x5   :  { %28 = dma.hbm_to_vmem [thread:$0]  %s21_s11, 256, %s23_s13, [#allocation3], %s188_s17, %s188_s17, %s189_s18  }
   0x6   :  { %s190_s19 = smov [#allocation5]  }
   0x7   :  { %s41_s20 = sshll.u32 %s190_s19, 4  ;;  %s42_s20 = int_to_ptr.vmem [resolvable:$true] %s41_s20 }
   0x8   :  { %47 = dma.hbm_to_vmem [thread:$0]  %s40_s16, 256, %s42_s20, [#allocation6], %s188_s17, %s188_s17, %s189_s18  }
   0x9   :  { %181 = dma.done.wait [#allocation3], 256  }
   0xa   :  { %182 = vsyncadd [#allocation3], 4294967040 }
   0xb   :  { %183 = dma.done.wait [#allocation6], 256  }
   0xc   :  { %184 = vsyncadd [#allocation6], 4294967040  ;;  %v69_v0 = vld [vmem:[#allocation5] sm:$0xff]  ;;  %v70_v1 = vld [vmem:[#allocation5 + $0x8] sm:$0xff]  ;;  %s191_s0 = smov [#allocation7]   ;;  %s88_s23 = sshll.u32 %s218_s2, 4  ;;  %s89_s23 = int_to_ptr.hbm [resolvable:$true] %s88_s23 }
   0xd   :  { %v71_v2 = vld [vmem:[#allocation2] sm:$0xff]  ;;  %v72_v3 = vld [vmem:[#allocation2 + $0x8] sm:$0xff]  ;;  %s86_s1 = sshll.u32 %s191_s0, 4  ;;  %s87_s1 = int_to_ptr.vmem [resolvable:$true] %s86_s1 }
   0xe   :  { %v73_v4 = vsub.f32 %v69_v0, %v71_v2  ;;  %v74_v5 = vsub.f32 %v70_v1, %v72_v3 }
  0x10   :  { %v75_v6 = vmul.f32 %v73_v4, %v73_v4  ;;  %v76_v7 = vmul.f32 %v74_v5, %v74_v5 }
  0x12   :  { %v78_v8 = vadd.f32 %v76_v7, %v75_v6 }
  0x14   :  { %80 = vst [vmem:[#allocation7] sm:$0xff] %v78_v8 }
  0x15   :  { %91 = dma.vmem_to_hbm [thread:$0]  %s87_s1, 128, %s89_s23, [#allocation4]  }
  0x16   :  { %185 = dma.done.wait [#allocation4], 128  }
  0x17   :  { %186 = vsyncadd [#allocation4], 4294967168 }
  0x18   :  { %96 = vsyncpa [#allocation3], 1 }
  0x19   :  { %97 = vsyncpa [#allocation6], 1 }
  0x1a   :  { %98 = vsyncpa [#allocation4], 1 }

</bundles_post_ra>
